<compile_context>
chip_gen: v6e
topology: v6e:2x2x1
jax: 0.10.0
libtpu: 0.0.40
codegen_flags: <defaults>
</compile_context>

<pallas_src>
import jax
import jax.numpy as jnp
from jax.experimental import pallas as pl
from jax.experimental.pallas import tpu as pltpu


def mlp_kernel(xT_ref, w1c0_ref, w1c1_ref, b1_ref, w2_ref, b2_ref, o_ref):
    xT = xT_ref[...]                                    # (2, tm), batch on lanes
    # fc1 (K=2): two VPU broadcast multiply-adds on already-resident vregs.
    h = (w1c0_ref[...] * xT[0:1, :]
         + w1c1_ref[...] * xT[1:2, :]
         + b1_ref[...])                                 # (H, tm)
    # Exact sigmoid with ONE EUP transcendental: sigmoid(x) = 0.5*(tanh(x/2)+1).
    h = 0.5 * (jnp.tanh(0.5 * h) + 1.0)
    # fc2 (N=1): elementwise multiply (VPU) + sublane reduce (XLU).
    y = jnp.sum(h * w2_ref[...], axis=0, keepdims=True) + b2_ref[...]   # (1, tm)
    o_ref[...] = y.astype(o_ref.dtype)                  # lane-dense store


def _pick_tile(B, block_b):
    if B <= 256:
        return B                       # latency path: one full-array block
    # Lane-aligned tile, capped so the batch grid has >= 2 steps (v7x megacore),
    # and bounded above by block_b to amortize per-step overhead at large B.
    return min(block_b, max(128, 128 * pl.cdiv(pl.cdiv(B, 2), 128)))


def mynet_forward_xt(xT, w1, b1, w2, b2, *, block_b=4096):
    """Fast path.  xT: (2, B) features-major input (no wrapper transpose/pad).
    w1: (H, 2), b1: (H,), w2: (1, H), b2: (1,).  Returns (1, B) float32."""
    K, B = xT.shape
    H = w1.shape[0]
    assert K == 2 and w1.shape == (H, 2) and w2.shape == (1, H)
    assert block_b % 128 == 0

    tm = _pick_tile(B, block_b)
    grid = (pl.cdiv(B, tm),)

    f32 = jnp.float32
    # Pre-split / reshape constants so the kernel never re-slices them per step.
    w1c0 = w1[:, 0:1].astype(f32)                       # (H, 1)
    w1c1 = w1[:, 1:2].astype(f32)                       # (H, 1)
    b1c = b1.reshape(H, 1).astype(f32)                  # (H, 1)
    w2c = w2.reshape(H, 1).astype(f32)                  # (H, 1)
    b2c = b2.reshape(1, 1).astype(f32)                  # (1, 1)

    const = lambda shape: pl.BlockSpec(shape, lambda i: (0, 0))   # VMEM-resident

    return pl.pallas_call(
        mlp_kernel,
        out_shape=jax.ShapeDtypeStruct((1, B), f32),
        grid=grid,
        in_specs=[
            pl.BlockSpec((2, tm), lambda i: (0, i)),    # x block, batch on lanes
            const((H, 1)),                              # w1[:, 0]
            const((H, 1)),                              # w1[:, 1]
            const((H, 1)),                              # b1
            const((H, 1)),                              # w2 column
            const((1, 1)),                              # b2
        ],
        out_specs=pl.BlockSpec((1, tm), lambda i: (0, i)),
        compiler_params=pltpu.CompilerParams(
            dimension_semantics=("parallel",)),
    )(xT.astype(f32), w1c0, w1c1, b1c, w2c, b2c)


def mynet_forward(x, w1, b1, w2, b2, *, block_b=4096):
    """Torch-style API.  x: (B, 2) -> (B, 1).  The single (B,2)->(2,B)
    transpose happens here once; prefer mynet_forward_xt when the producer can
    emit features-major (2, B) data directly (avoids that extra HBM pass)."""
    out = mynet_forward_xt(x.T, w1, b1, w2, b2, block_b=block_b)   # (1, B)
    return out.T                                        # (1,B)->(B,1): layout-trivial


if __name__ == "__main__":
    hidden_size = 10
    in_features = 2
    out_features = 1
    batch = 8

    key = jax.random.PRNGKey(0)
    k_x, k_w1, k_b1, k_w2, k_b2, k_x2 = jax.random.split(key, 6)

    # torch.nn.Linear default init: U(-1/sqrt(fan_in), 1/sqrt(fan_in))
    bound1 = 1.0 / jnp.sqrt(in_features)
    w1 = jax.random.uniform(k_w1, (hidden_size, in_features),
                            minval=-bound1, maxval=bound1, dtype=jnp.float32)
    b1 = jax.random.uniform(k_b1, (hidden_size,),
                            minval=-bound1, maxval=bound1, dtype=jnp.float32)
    bound2 = 1.0 / jnp.sqrt(hidden_size)
    w2 = jax.random.uniform(k_w2, (out_features, hidden_size),
                            minval=-bound2, maxval=bound2, dtype=jnp.float32)
    b2 = jax.random.uniform(k_b2, (out_features,),
                            minval=-bound2, maxval=bound2, dtype=jnp.float32)

    def ref_fn(xv):
        return (1.0 / (1.0 + jnp.exp(-(xv @ w1.T + b1)))) @ w2.T + b2

    # Small torch-shaped batch (spec feeds 2-feature points in [0, 3]).
    x = jax.random.uniform(k_x, (batch, in_features),
                           minval=0.0, maxval=3.0, dtype=jnp.float32)
    out = mynet_forward(x, w1, b1, w2, b2)
    jax.block_until_ready(out)
    assert out.shape == (batch, out_features)
    assert jnp.allclose(out, ref_fn(x), atol=1e-5, rtol=1e-5)

    # Gridded fast path: B not a multiple of the tile -> exercises the masked
    # boundary block and a multi-step "parallel" batch grid (no pad, no slice,
    # no wrapper transpose).
    big_b = 300
    xT_big = jax.random.uniform(k_x2, (in_features, big_b),
                                minval=0.0, maxval=3.0, dtype=jnp.float32)
    out_big = mynet_forward_xt(xT_big, w1, b1, w2, b2, block_b=128)
    jax.block_until_ready(out_big)
    assert out_big.shape == (1, big_b)
    assert jnp.allclose(out_big.T, ref_fn(xT_big.T), atol=1e-5, rtol=1e-5)

    print("KERNEL_OK")
</pallas_src>

<mosaic_0001>
module attributes {stable_mosaic.version = 11 : i64} {
  func.func @mlp_kernel(%arg0: i32, %arg1: memref<2x8xf32, #tpu.memory_space<vmem>>, %arg2: memref<10x1xf32, #tpu.memory_space<vmem>>, %arg3: memref<10x1xf32, #tpu.memory_space<vmem>>, %arg4: memref<10x1xf32, #tpu.memory_space<vmem>>, %arg5: memref<10x1xf32, #tpu.memory_space<vmem>>, %arg6: memref<1x1xf32, #tpu.memory_space<vmem>>, %arg7: memref<1x8xf32, #tpu.memory_space<vmem>>) attributes {dimension_semantics = [#tpu.dimension_semantics<parallel>], iteration_bounds = array<i64: 1>, scalar_prefetch = 0 : i64, scratch_operands = 0 : i64, tpu.core_type = #tpu.core_type<tc>, window_params = [{transform_indices = @transform_0, window_bounds = array<i64: 2, 8>}, {pipeline_mode = #tpu.pipeline_mode<synchronous>, transform_indices = @transform_1, window_bounds = array<i64: 10, 1>}, {pipeline_mode = #tpu.pipeline_mode<synchronous>, transform_indices = @transform_2, window_bounds = array<i64: 10, 1>}, {pipeline_mode = #tpu.pipeline_mode<synchronous>, transform_indices = @transform_3, window_bounds = array<i64: 10, 1>}, {pipeline_mode = #tpu.pipeline_mode<synchronous>, transform_indices = @transform_4, window_bounds = array<i64: 10, 1>}, {pipeline_mode = #tpu.pipeline_mode<synchronous>, transform_indices = @transform_5, window_bounds = array<i64: 1, 1>}, {transform_indices = @transform_6, window_bounds = array<i64: 1, 8>}]} {
    %c0 = arith.constant 0 : index
    %c0_0 = arith.constant 0 : index
    %0 = vector.load %arg1[%c0, %c0_0] : memref<2x8xf32, #tpu.memory_space<vmem>>, vector<2x8xf32>
    %c0_1 = arith.constant 0 : index
    %c0_2 = arith.constant 0 : index
    %1 = vector.load %arg2[%c0_1, %c0_2] : memref<10x1xf32, #tpu.memory_space<vmem>>, vector<10x1xf32>
    %2 = vector.extract_strided_slice %0 {offsets = [0, 0], sizes = [1, 8], strides = [1, 1]} : vector<2x8xf32> to vector<1x8xf32>
    %3 = vector.broadcast %1 : vector<10x1xf32> to vector<10x8xf32>
    %4 = vector.broadcast %2 : vector<1x8xf32> to vector<10x8xf32>
    %5 = arith.mulf %3, %4 : vector<10x8xf32>
    %c0_3 = arith.constant 0 : index
    %c0_4 = arith.constant 0 : index
    %6 = vector.load %arg3[%c0_3, %c0_4] : memref<10x1xf32, #tpu.memory_space<vmem>>, vector<10x1xf32>
    %7 = vector.extract_strided_slice %0 {offsets = [1, 0], sizes = [1, 8], strides = [1, 1]} : vector<2x8xf32> to vector<1x8xf32>
    %8 = vector.broadcast %6 : vector<10x1xf32> to vector<10x8xf32>
    %9 = vector.broadcast %7 : vector<1x8xf32> to vector<10x8xf32>
    %10 = arith.mulf %8, %9 : vector<10x8xf32>
    %11 = arith.addf %5, %10 : vector<10x8xf32>
    %c0_5 = arith.constant 0 : index
    %c0_6 = arith.constant 0 : index
    %12 = vector.load %arg4[%c0_5, %c0_6] : memref<10x1xf32, #tpu.memory_space<vmem>>, vector<10x1xf32>
    %13 = vector.broadcast %12 : vector<10x1xf32> to vector<10x8xf32>
    %14 = arith.addf %11, %13 : vector<10x8xf32>
    %cst = arith.constant 5.000000e-01 : f32
    %15 = vector.broadcast %cst : f32 to vector<10x8xf32>
    %16 = arith.mulf %15, %14 : vector<10x8xf32>
    %17 = math.tanh %16 : vector<10x8xf32>
    %cst_7 = arith.constant 1.000000e+00 : f32
    %18 = vector.broadcast %cst_7 : f32 to vector<10x8xf32>
    %19 = arith.addf %17, %18 : vector<10x8xf32>
    %cst_8 = arith.constant 5.000000e-01 : f32
    %20 = vector.broadcast %cst_8 : f32 to vector<10x8xf32>
    %21 = arith.mulf %20, %19 : vector<10x8xf32>
    %c0_9 = arith.constant 0 : index
    %c0_10 = arith.constant 0 : index
    %22 = vector.load %arg5[%c0_9, %c0_10] : memref<10x1xf32, #tpu.memory_space<vmem>>, vector<10x1xf32>
    %23 = vector.broadcast %22 : vector<10x1xf32> to vector<10x8xf32>
    %24 = arith.mulf %21, %23 : vector<10x8xf32>
    %cst_11 = arith.constant dense<0.000000e+00> : vector<8xf32>
    %25 = vector.multi_reduction <add>, %24, %cst_11 [0] : vector<10x8xf32> to vector<8xf32>
    %26 = vector.shape_cast %25 : vector<8xf32> to vector<1x8xf32>
    %c0_12 = arith.constant 0 : index
    %c0_13 = arith.constant 0 : index
    %27 = vector.load %arg6[%c0_12, %c0_13] : memref<1x1xf32, #tpu.memory_space<vmem>>, vector<1x1xf32>
    %28 = vector.broadcast %27 : vector<1x1xf32> to vector<1x8xf32>
    %29 = arith.addf %26, %28 : vector<1x8xf32>
    %c0_14 = arith.constant 0 : index
    %c0_15 = arith.constant 0 : index
    %30 = vector.load %arg7[%c0_14, %c0_15] : memref<1x8xf32, #tpu.memory_space<vmem>>, vector<1x8xf32>
    tpu.vector_store %arg7[%c0_14, %c0_15], %29 {strides = array<i32>} : memref<1x8xf32, #tpu.memory_space<vmem>>, vector<1x8xf32>,
    return
  }
  func.func @transform_0(%arg0: i32) -> (i32, i32) {
    %c0_i32 = arith.constant 0 : i32
    %c0_i32_0 = arith.constant 0 : i32
    return %c0_i32, %arg0 : i32, i32
  }
  func.func @transform_1(%arg0: i32) -> (i32, i32) {
    %c0_i32 = arith.constant 0 : i32
    %c0_i32_0 = arith.constant 0 : i32
    %c0_i32_1 = arith.constant 0 : i32
    return %c0_i32, %c0_i32_0 : i32, i32
  }
  func.func @transform_2(%arg0: i32) -> (i32, i32) {
    %c0_i32 = arith.constant 0 : i32
    %c0_i32_0 = arith.constant 0 : i32
    %c0_i32_1 = arith.constant 0 : i32
    return %c0_i32, %c0_i32_0 : i32, i32
  }
  func.func @transform_3(%arg0: i32) -> (i32, i32) {
    %c0_i32 = arith.constant 0 : i32
    %c0_i32_0 = arith.constant 0 : i32
    %c0_i32_1 = arith.constant 0 : i32
    return %c0_i32, %c0_i32_0 : i32, i32
  }
  func.func @transform_4(%arg0: i32) -> (i32, i32) {
    %c0_i32 = arith.constant 0 : i32
    %c0_i32_0 = arith.constant 0 : i32
    %c0_i32_1 = arith.constant 0 : i32
    return %c0_i32, %c0_i32_0 : i32, i32
  }
  func.func @transform_5(%arg0: i32) -> (i32, i32) {
    %c0_i32 = arith.constant 0 : i32
    %c0_i32_0 = arith.constant 0 : i32
    %c0_i32_1 = arith.constant 0 : i32
    return %c0_i32, %c0_i32_0 : i32, i32
  }
  func.func @transform_6(%arg0: i32) -> (i32, i32) {
    %c0_i32 = arith.constant 0 : i32
    %c0_i32_0 = arith.constant 0 : i32
    return %c0_i32, %arg0 : i32, i32
  }
}

</mosaic_0001>

<bundles_post_ra>
// kernel: tpu_custom_call.1
= control target key start
LH: loop header
LB: loop body
LE: loop exit
PB: predicated region body
PF: predicated region fallthrough
CT: control target
= control target key end

     0   :  { %s239_s0 = inlined_call_operand.vmem [shape: f32[2,8], index: 0, kind: input, shape index: {}]   ;;  %s240_s1 = inlined_call_operand.vmem [shape: f32[10,1], index: 1, kind: input, shape index: {}]   ;;  %s241_s2 = inlined_call_operand.vmem [shape: f32[10,1], index: 2, kind: input, shape index: {}]   ;;  %s242_s3 = inlined_call_operand.vmem [shape: f32[10,1], index: 3, kind: input, shape index: {}]   ;;  %s243_s4 = inlined_call_operand.vmem [shape: f32[10,1], index: 4, kind: input, shape index: {}]   ;;  %s244_s5 = inlined_call_operand.<no memory space> [shape: f32[1,1], index: 5, kind: input, shape index: {}]   ;;  %s245_s6 = inlined_call_operand.hbm [shape: f32[1,8], index: 6, kind: output, shape index: {}]  }
   0x1   :  { %v11_v0 = vstv %s244_s5 }
   0x2   :  { %12 = vst [vmem:[#allocation2] sm:$0x1] %v11_v0 }
   0x3   :  { %v45_v1 = vld [vmem:[%s241_s2] sm:$0xff]  ;;  %v169_v3 = vmov 0   ;;  %v46_v4 = vld [vmem:[%s241_s2 + $0x8] sm:$0x3] }
   0x4   :  { %v27_v2 = vld [vmem:[%s240_s1] sm:$0xff]  ;;  %142 = vset.pattern.permute.xlu1 %v169_v3  ;;  %141 = vset.pattern.permute.xlu0 %v169_v3  ;;  %v28_v5 = vld [vmem:[%s240_s1 + $0x8] sm:$0x3] }
   0x5   :  { %49 = vperm.xlu1 %142, %v45_v1   ;;  %31 = vperm.xlu0 %141, %v27_v2  }
   0x6   :  { %13 = vsyncpa [#allocation4], 0  ;;  %v66_v6 = vld [vmem:[%s242_s3 + $0x8] sm:$0x3]  ;;  %v65_v7 = vld [vmem:[%s242_s3] sm:$0xff]  ;;  %v39_v11 = vlaneseq  ;;  %vm103_vm0 = vcmask 58368  }
   0x7   :  { %v88_v8 = vld [vmem:[%s243_s4 + $0x8] sm:$0x3]  ;;  %v87_v9 = vld [vmem:[%s243_s4] sm:$0xff]  ;;  %vm101_vm1 = vcmask 64512   ;;  %vm123_vm2 = vcmask 57344  }
   0x8   :  { %v40_v12 = vshrl.u32 %v39_v11, 7  ;;  %v26_v15 = vld [vmem:[%s239_s0] sm:$0x3]  ;;  %s170_s0 = smov [#allocation3]  }
   0x9   :  { %54 = vperm.xlu1 %142, %v46_v4   ;;  %36 = vperm.xlu0 %141, %v28_v5   ;;  %v112_v10 = vld [vmem:[#allocation2] sm:$0x1]  ;;  %s131_s4 = sshll.u32 %s170_s0, 4  ;;  %s132_s4 = int_to_ptr.vmem [resolvable:$true] %s131_s4 }
   0xa   :  { %v59_v13 = vsub.s32 1, %v40_v12  ;;  %v41_v14 = vsub.s32 0, %v40_v12  ;;  %s147_s13 = scalar_lea.vmem %s132_s4, 16  ;;  %s151_s14 = scalar_lea.vmem %s132_s4, 32 }
   0xb   :  { %p148_p0 = scmp.ne.s32.totalorder %s132_s4, %s147_s13  ;;  %p152_p1 = scmp.lt.s32.totalorder %s132_s4, %s132_s4 }
   0xc   :  { %v60_v16 = vrot.slane %v26_v15, %v59_v13  ;;  %v42_v17 = vrot.slane %v26_v15, %v41_v14  ;;  %p153_p2 = scmp.lt.s32.totalorder %s151_s14, %s147_s13 }
   0xd   :  { %74 = vperm.xlu1 %142, %v66_v6   ;;  %69 = vperm.xlu0 %141, %v65_v7  }
   0xe   :  { %p154_p3 = por %p153_p2, %p152_p1 }
  0x10   :  { %p155_p4 = pnand %p154_p3, %p148_p0 }
  0x11   :  { %96 = vperm.xlu1 %142, %v88_v8   ;;  %91 = vperm.xlu0 %141, %v87_v9  }
  0x15   :  { %115 = vperm.xlu0 %141, %v112_v10  }
  0x80   :  { %v50_v18 = vpop.permute.xlu1 %49  ;;  %v32_v19 = vpop.permute.xlu0 %31 }
  0x81   :  { %v61_v20 = vmul.f32 %v60_v16, %v50_v18  ;;  %v43_v21 = vmul.f32 %v42_v17, %v32_v19 }
  0x83   :  { %v63_v27 = vadd.f32 %v61_v20, %v43_v21 }
  0x84   :  { %v55_v22 = vpop.permute.xlu1 %54  ;;  %v37_v23 = vpop.permute.xlu0 %36 }
  0x85   :  { %v62_v24 = vmul.f32 %v60_v16, %v55_v22  ;;  %v44_v25 = vmul.f32 %v42_v17, %v37_v23 }
  0x87   :  { %v64_v26 = vadd.f32 %v62_v24, %v44_v25 }
  0x88   :  { %v75_v28 = vpop.permute.xlu1 %74  ;;  %v70_v29 = vpop.permute.xlu0 %69 }
  0x89   :  { %v78_v30 = vadd.f32 %v75_v28, %v64_v26  ;;  %v77_v31 = vadd.f32 %v70_v29, %v63_v27 }
  0x8b   :  { %v80_v32 = vmul.f32 0.5, %v78_v30  ;;  %v79_v33 = vmul.f32 0.5, %v77_v31 }
  0x8c   :  { %v97_v39 = vpop.permute.xlu1 %96  ;;  %v92_v42 = vpop.permute.xlu0 %91 }
  0x8d   :  { %143 = vtanh.f32 %v80_v32 }
  0x8e   :  { %145 = vtanh.f32 %v79_v33 }
  0x90   :  { %v116_v51 = vpop.permute.xlu0 %115 }
  0x91   :  { %v121_v54 = vrot.slane %v116_v51, %v41_v14 }
  0x9a   :  { %v144_v34 = vpop.eup %143 }
  0x9b   :  { %v146_v35 = vpop.eup %145  ;;  %v84_v36 = vadd.f32 1.0, %v144_v34 }
  0x9c   :  { %v83_v37 = vadd.f32 1.0, %v146_v35 }
  0x9d   :  { %v86_v38 = vmul.f32 0.5, %v84_v36 }
  0x9e   :  { %v85_v40 = vmul.f32 0.5, %v83_v37 }
  0x9f   :  { %v100_v41 = vmul.f32 %v97_v39, %v86_v38 }
  0xa0   :  { %v99_v43 = vmul.f32 %v92_v42, %v85_v40 }
  0xa1   :  { %v104_v44 = vsel %vm103_vm0, %v100_v41, 0.0 }
  0xa2   :  { %v102_v45 = vsel %vm101_vm1, %v99_v43, 0.0 }
  0xa3   :  { %v105_v46 = vadd.f32 %v104_v44, %v102_v45 }
  0xa5   :  { %v106_v47 = vrot.slane %v105_v46, 4 }
  0xa7   :  { %v107_v48 = vadd.f32 %v106_v47, %v105_v46 }
  0xa9   :  { %v108_v49 = vrot.slane %v107_v48, 2 }
  0xab   :  { %v109_v50 = vadd.f32 %v108_v49, %v107_v48 }
  0xad   :  { %v110_v52 = vrot.slane %v109_v50, 1 }
  0xaf   :  { %v111_v53 = vadd.f32 %v110_v52, %v109_v50 }
  0xb1   :  { %v122_v55 = vadd.f32 %v121_v54, %v111_v53 }
  0xb3   :  { %124 = vst.msk [vmem:[#allocation3] sm:$0x1] %vm123_vm2, %v122_v55 }
  0xb4   :  { %158 = shalt.err (!%p155_p4)
}
  0xb5   :  { %134 = dma.vmem_to_hbm [thread:$0]  %s132_s4, 16, %s245_s6, [#allocation4]  }
  0xb6   :  { %167 = dma.done.wait [#allocation4], 16  }
  0xb7   :  { %168 = vsyncadd [#allocation4], 4294967280 }
  0xb8   :  { %138 = vsyncpa [#allocation4], 1 }

</bundles_post_ra>
